<compile_context>
chip_gen: v7x
topology: tpu7x:2x2x1
jax: 0.10.0
libtpu: 0.0.40
codegen_flags: <defaults>
</compile_context>

<pallas_src>
import math
import jax
import jax.numpy as jnp
from jax.experimental import pallas as pl
from jax.experimental.pallas import tpu as pltpu


def _layernorm(v, g, b, eps=1e-5):
    mu = jnp.mean(v, axis=-1, keepdims=True)
    var = jnp.mean((v - mu) ** 2, axis=-1, keepdims=True)
    return (v - mu) * jax.lax.rsqrt(var + eps) * g + b


def _make_kernel(num_heads, embed_dim, batch_block, seq_len, mm_dtype=None):
    NH, E = num_heads, embed_dim
    hd = E // NH
    BB, L = batch_block, seq_len
    M = BB * L
    inv_sqrt2 = 1.0 / math.sqrt(2.0)

    cast = (lambda t: t) if mm_dtype is None else (lambda t: t.astype(mm_dtype))

    def kernel(x_ref, ln1_g, ln1_b, wqkv_t, bqkv, wo_t, bo,
               ln2_g, ln2_b, w1_t, b1, w2_t, b2, o_ref):
        # (BB, L, E) contiguous batch-major block -> fold batch into the matmul M dim.
        xf = x_ref[...].reshape(M, E).astype(jnp.float32)

        # ---------------- attention branch ----------------
        h1 = _layernorm(xf, ln1_g[...], ln1_b[...])

        # One fused wide projection.  Column order of wqkv_t is [q|k|v][head][dim];
        # 1/sqrt(head_dim) is already folded into the Q columns and bias on the host.
        qkv = jnp.dot(cast(h1), cast(wqkv_t[...]),
                      preferred_element_type=jnp.float32) + bqkv[...]          # (M, 3E)

        # Single relayout per tensor: static lane slices per head, stacked once into the
        # attention batch axis (heads cannot reach a leading axis by a pure reshape).
        def split_heads(g):
            base = g * E
            parts = [qkv[:, base + h * hd: base + (h + 1) * hd] for h in range(NH)]
            return jnp.stack(parts, axis=0).reshape(NH * BB, L, hd)

        qh, kh, vh = split_heads(0), split_heads(1), split_heads(2)

        # Batched scores / softmax / PV over all NH*BB head instances.
        s = jnp.einsum('ald,amd->alm', cast(qh), cast(kh),
                       preferred_element_type=jnp.float32)                      # (NH*BB, L, L)
        s = s - jnp.max(s, axis=-1, keepdims=True)
        p = jnp.exp(s)
        p = p * pl.reciprocal(jnp.sum(p, axis=-1, keepdims=True), approx=True)
        o = jnp.einsum('alm,amd->ald', cast(p), cast(vh),
                       preferred_element_type=jnp.float32)                      # (NH*BB, L, hd)

        # Reassemble heads once (lane concat) -> single full-depth out-projection matmul.
        o = o.reshape(NH, M, hd)
        o_cat = jnp.concatenate([o[h] for h in range(NH)], axis=-1)             # (M, E)
        xf = xf + jnp.dot(cast(o_cat), cast(wo_t[...]),
                          preferred_element_type=jnp.float32) + bo[...]

        # ---------------- MLP branch ----------------
        h2 = _layernorm(xf, ln2_g[...], ln2_b[...])
        h2 = jnp.dot(cast(h2), cast(w1_t[...]),
                     preferred_element_type=jnp.float32) + b1[...]
        # exact (erf-based) GELU, matching nn.GELU() default
        h2 = 0.5 * h2 * (1.0 + jax.lax.erf(h2 * inv_sqrt2))
        h2 = jnp.dot(cast(h2), cast(w2_t[...]),
                     preferred_element_type=jnp.float32) + b2[...]
        xf = xf + h2
        # TODO(synk): nn.Dropout layers are identity here (dropout=0.0 / eval mode).

        o_ref[...] = xf.reshape(BB, L, E).astype(o_ref.dtype)

    return kernel


def transformer_block_forward(x, params, num_heads, matmul_dtype=None, batch_block=None):
    """Batch-major entry point.  x: (N, L, E).  Returns (N, L, E)."""
    N, L, E = x.shape
    H = params["w1"].shape[0]
    NH = num_heads
    assert E % NH == 0
    hd = E // NH
    scale = 1.0 / math.sqrt(hd)
    f32 = jnp.float32

    # --- host-side weight prep: fused, pre-transposed projection weights ---
    wqkv, bqkv = params["wqkv"], params["bqkv"]                 # (3E, E), (3E,)
    qscale = jnp.concatenate([jnp.full((E,), scale, f32), jnp.ones((2 * E,), f32)])
    wqkv_t = (wqkv * qscale[:, None]).T                         # (E, 3E), cols [q|k|v][h][d]
    bqkv_r = (bqkv * qscale).reshape(1, 3 * E)
    wo_t = params["wo"].T                                       # (E, E)
    bo = params["bo"].reshape(1, E)

    ln1_g = params["ln1_g"].reshape(1, E)
    ln1_b = params["ln1_b"].reshape(1, E)
    ln2_g = params["ln2_g"].reshape(1, E)
    ln2_b = params["ln2_b"].reshape(1, E)
    w1_t = params["w1"].T
    b1 = params["b1"].reshape(1, H)
    w2_t = params["w2"].T
    b2 = params["b2"].reshape(1, E)

    if matmul_dtype is not None:
        # Host-side weight cast: halves weight HBM->VMEM bytes and VMEM residency; only
        # activations are cast in-kernel.  (Use bf16 on v6e/v7x; v7x MXU has no int path.)
        wqkv_t, wo_t, w1_t, w2_t = (a.astype(matmul_dtype)
                                    for a in (wqkv_t, wo_t, w1_t, w2_t))

    # --- grid: several pipelined steps over the batch (both v7x cores busy for any N>=2) ---
    if batch_block is None:
        target = max(1, N // 8)                 # aim for ~8 grid steps at realistic N
        batch_block = target if N % target == 0 else 1
    BB = batch_block
    assert N % BB == 0, "batch_block must divide the batch"
    steps = N // BB

    def full(shape):
        zeros = tuple(0 for _ in shape)
        return pl.BlockSpec(shape, lambda i, _z=zeros: _z)

    in_specs = [
        pl.BlockSpec((BB, L, E), lambda i: (i, 0, 0)),   # x (batch-major slab)
        full((1, E)), full((1, E)),                      # ln1 gamma, beta
        full((E, 3 * E)), full((1, 3 * E)),              # fused QKV weight (Q pre-scaled), bias
        full((E, E)), full((1, E)),                      # out-proj weight, bias
        full((1, E)), full((1, E)),                      # ln2 gamma, beta
        full((E, H)), full((1, H)),                      # mlp fc1 (pre-transposed), bias
        full((H, E)), full((1, E)),                      # mlp fc2 (pre-transposed), bias
    ]
    out_spec = pl.BlockSpec((BB, L, E), lambda i: (i, 0, 0))

    kern = _make_kernel(NH, E, BB, L, matmul_dtype)

    # Advisory cost estimate so XLA schedules surrounding ops around the custom call.
    Mtot = N * L
    flops = int(2 * Mtot * E * 3 * E          # fused qkv projection
                + 4 * N * NH * L * L * hd     # scores + PV
                + 2 * Mtot * E * E            # out projection
                + 4 * Mtot * E * H)           # mlp fc1 + fc2
    transcendentals = int(N * NH * L * L + Mtot * H)
    args = (x, ln1_g, ln1_b, wqkv_t, bqkv_r, wo_t, bo, ln2_g, ln2_b, w1_t, b1, w2_t, b2)
    bytes_accessed = int(sum(a.size * a.dtype.itemsize for a in args)
                         + Mtot * E * x.dtype.itemsize)

    out = pl.pallas_call(
        kern,
        out_shape=jax.ShapeDtypeStruct((N, L, E), x.dtype),
        grid_spec=pltpu.PrefetchScalarGridSpec(
            num_scalar_prefetch=0,
            grid=(steps,),
            in_specs=in_specs,
            out_specs=out_spec,
        ),
        # Weights/activations are tiny at test size; no vmem_limit_bytes override needed here.
        compiler_params=pltpu.CompilerParams(dimension_semantics=("parallel",)),
        cost_estimate=pl.CostEstimate(flops=flops,
                                      transcendentals=transcendentals,
                                      bytes_accessed=bytes_accessed),
    )(*args)
    return out


def transformer_block_forward_seq_first(x, params, num_heads, **kw):
    """Drop-in layout parity with the PyTorch module (seq-first (L, N, E), as used by
    nn.MultiheadAttention's default batch_first=False).  Prefer the batch-major entry point
    and fold these transposes into the producer/consumer — each is a full HBM pass."""
    x_nle = jnp.transpose(x, (1, 0, 2))
    out = transformer_block_forward(x_nle, params, num_heads, **kw)
    return jnp.transpose(out, (1, 0, 2))


def _reference_nle(x, params, num_heads):
    """Pure-JAX reference mirroring the PyTorch TransformerBlock forward (batch-major input)."""
    N, L, E = x.shape
    hd = E // num_heads

    def ln(v, g, b):
        mu = jnp.mean(v, axis=-1, keepdims=True)
        var = jnp.mean((v - mu) ** 2, axis=-1, keepdims=True)
        return (v - mu) * jax.lax.rsqrt(var + 1e-5) * g + b

    h1 = ln(x, params["ln1_g"], params["ln1_b"])
    qkv = jnp.einsum('nle,fe->nlf', h1, params["wqkv"]) + params["bqkv"]
    q, k, v = jnp.split(qkv, 3, axis=-1)
    q = q.reshape(N, L, num_heads, hd) / math.sqrt(hd)
    k = k.reshape(N, L, num_heads, hd)
    v = v.reshape(N, L, num_heads, hd)
    s = jnp.einsum('nlhd,nmhd->nhlm', q, k)
    p = jax.nn.softmax(s, axis=-1)
    o = jnp.einsum('nhlm,nmhd->nlhd', p, v).reshape(N, L, E)
    attn = jnp.einsum('nle,fe->nlf', o, params["wo"]) + params["bo"]
    x = x + attn
    h2 = ln(x, params["ln2_g"], params["ln2_b"])
    h2 = jnp.einsum('nle,he->nlh', h2, params["w1"]) + params["b1"]
    h2 = 0.5 * h2 * (1.0 + jax.lax.erf(h2 / math.sqrt(2.0)))
    h2 = jnp.einsum('nlh,eh->nle', h2, params["w2"]) + params["b2"]
    return x + h2


if __name__ == "__main__":
    # TransformerBlock(embed_dim=32, hidden_dim=64, num_heads=4, dropout=0.0)
    E, H, NH = 32, 64, 4
    L, N = 8, 2          # seq_len, batch

    key = jax.random.PRNGKey(0)
    kx, k0, k1, k2, k3, k4, k5, k6, k7 = jax.random.split(key, 9)

    params = {
        "ln1_g": jnp.ones((E,), jnp.float32),
        "ln1_b": jnp.zeros((E,), jnp.float32),
        "wqkv": 0.05 * jax.random.normal(k0, (3 * E, E), jnp.float32),   # in_proj_weight
        "bqkv": 0.01 * jax.random.normal(k1, (3 * E,), jnp.float32),     # in_proj_bias
        "wo":   0.05 * jax.random.normal(k2, (E, E), jnp.float32),       # out_proj.weight
        "bo":   0.01 * jax.random.normal(k3, (E,), jnp.float32),         # out_proj.bias
        "ln2_g": jnp.ones((E,), jnp.float32),
        "ln2_b": jnp.zeros((E,), jnp.float32),
        "w1": 0.05 * jax.random.normal(k4, (H, E), jnp.float32),         # linear[0].weight
        "b1": 0.01 * jax.random.normal(k5, (H,), jnp.float32),           # linear[0].bias
        "w2": 0.05 * jax.random.normal(k6, (E, H), jnp.float32),         # linear[3].weight
        "b2": 0.01 * jax.random.normal(k7, (E,), jnp.float32),           # linear[3].bias
    }

    x = jax.random.normal(kx, (N, L, E), jnp.float32)     # batch-major (N, L, E)

    out = transformer_block_forward(x, params, NH)
    jax.block_until_ready(out)
    assert out.shape == (N, L, E) and out.dtype == jnp.float32
    assert bool(jnp.all(jnp.isfinite(out)))

    ref = _reference_nle(x, params, NH)
    max_err = float(jnp.max(jnp.abs(out - ref)))
    assert max_err < 2e-2, f"mismatch vs reference: {max_err}"

    # Seq-first (PyTorch-layout) convenience wrapper should match too.
    x_lne = jnp.transpose(x, (1, 0, 2))
    out_seq = transformer_block_forward_seq_first(x_lne, params, NH)
    jax.block_until_ready(out_seq)
    err_seq = float(jnp.max(jnp.abs(out_seq - jnp.transpose(ref, (1, 0, 2)))))
    assert err_seq < 2e-2, f"seq-first wrapper mismatch: {err_seq}"

    print("KERNEL_OK")
</pallas_src>

<mosaic_0001>
module attributes {stable_mosaic.version = 11 : i64} {
  func.func @kernel(%arg0: i32, %arg1: memref<1x8x32xf32, #tpu.memory_space<vmem>>, %arg2: memref<1x32xf32, #tpu.memory_space<vmem>>, %arg3: memref<1x32xf32, #tpu.memory_space<vmem>>, %arg4: memref<32x96xf32, #tpu.memory_space<vmem>>, %arg5: memref<1x96xf32, #tpu.memory_space<vmem>>, %arg6: memref<32x32xf32, #tpu.memory_space<vmem>>, %arg7: memref<1x32xf32, #tpu.memory_space<vmem>>, %arg8: memref<1x32xf32, #tpu.memory_space<vmem>>, %arg9: memref<1x32xf32, #tpu.memory_space<vmem>>, %arg10: memref<32x64xf32, #tpu.memory_space<vmem>>, %arg11: memref<1x64xf32, #tpu.memory_space<vmem>>, %arg12: memref<64x32xf32, #tpu.memory_space<vmem>>, %arg13: memref<1x32xf32, #tpu.memory_space<vmem>>, %arg14: memref<1x8x32xf32, #tpu.memory_space<vmem>>) attributes {dimension_semantics = [#tpu.dimension_semantics<parallel>], iteration_bounds = array<i64: 2>, scalar_prefetch = 0 : i64, scratch_operands = 0 : i64, tpu.core_type = #tpu.core_type<tc>, window_params = [{transform_indices = @transform_0, window_bounds = array<i64: 1, 8, 32>}, {pipeline_mode = #tpu.pipeline_mode<synchronous>, transform_indices = @transform_1, window_bounds = array<i64: 1, 32>}, {pipeline_mode = #tpu.pipeline_mode<synchronous>, transform_indices = @transform_2, window_bounds = array<i64: 1, 32>}, {pipeline_mode = #tpu.pipeline_mode<synchronous>, transform_indices = @transform_3, window_bounds = array<i64: 32, 96>}, {pipeline_mode = #tpu.pipeline_mode<synchronous>, transform_indices = @transform_4, window_bounds = array<i64: 1, 96>}, {pipeline_mode = #tpu.pipeline_mode<synchronous>, transform_indices = @transform_5, window_bounds = array<i64: 32, 32>}, {pipeline_mode = #tpu.pipeline_mode<synchronous>, transform_indices = @transform_6, window_bounds = array<i64: 1, 32>}, {pipeline_mode = #tpu.pipeline_mode<synchronous>, transform_indices = @transform_7, window_bounds = array<i64: 1, 32>}, {pipeline_mode = #tpu.pipeline_mode<synchronous>, transform_indices = @transform_8, window_bounds = array<i64: 1, 32>}, {pipeline_mode = #tpu.pipeline_mode<synchronous>, transform_indices = @transform_9, window_bounds = array<i64: 32, 64>}, {pipeline_mode = #tpu.pipeline_mode<synchronous>, transform_indices = @transform_10, window_bounds = array<i64: 1, 64>}, {pipeline_mode = #tpu.pipeline_mode<synchronous>, transform_indices = @transform_11, window_bounds = array<i64: 64, 32>}, {pipeline_mode = #tpu.pipeline_mode<synchronous>, transform_indices = @transform_12, window_bounds = array<i64: 1, 32>}, {transform_indices = @transform_13, window_bounds = array<i64: 1, 8, 32>}]} {
    %c0 = arith.constant 0 : index
    %c0_0 = arith.constant 0 : index
    %c0_1 = arith.constant 0 : index
    %0 = vector.load %arg1[%c0, %c0_0, %c0_1] : memref<1x8x32xf32, #tpu.memory_space<vmem>>, vector<1x8x32xf32>
    %1 = vector.shape_cast %0 : vector<1x8x32xf32> to vector<8x32xf32>
    %c0_2 = arith.constant 0 : index
    %c0_3 = arith.constant 0 : index
    %2 = vector.load %arg2[%c0_2, %c0_3] : memref<1x32xf32, #tpu.memory_space<vmem>>, vector<1x32xf32>
    %c0_4 = arith.constant 0 : index
    %c0_5 = arith.constant 0 : index
    %3 = vector.load %arg3[%c0_4, %c0_5] : memref<1x32xf32, #tpu.memory_space<vmem>>, vector<1x32xf32>
    %cst = arith.constant dense<0.000000e+00> : vector<8xf32>
    %4 = vector.multi_reduction <add>, %1, %cst [1] : vector<8x32xf32> to vector<8xf32>
    %5 = vector.shape_cast %4 : vector<8xf32> to vector<8x1xf32>
    %cst_6 = arith.constant 3.200000e+01 : f32
    %6 = vector.broadcast %cst_6 : f32 to vector<8x1xf32>
    %7 = arith.divf %5, %6 : vector<8x1xf32>
    %8 = vector.broadcast %7 : vector<8x1xf32> to vector<8x32xf32>
    %9 = arith.subf %1, %8 : vector<8x32xf32>
    %10 = arith.mulf %9, %9 : vector<8x32xf32>
    %cst_7 = arith.constant dense<0.000000e+00> : vector<8xf32>
    %11 = vector.multi_reduction <add>, %10, %cst_7 [1] : vector<8x32xf32> to vector<8xf32>
    %12 = vector.shape_cast %11 : vector<8xf32> to vector<8x1xf32>
    %cst_8 = arith.constant 3.200000e+01 : f32
    %13 = vector.broadcast %cst_8 : f32 to vector<8x1xf32>
    %14 = arith.divf %12, %13 : vector<8x1xf32>
    %15 = vector.broadcast %7 : vector<8x1xf32> to vector<8x32xf32>
    %16 = arith.subf %1, %15 : vector<8x32xf32>
    %cst_9 = arith.constant 9.99999974E-6 : f32
    %17 = vector.broadcast %cst_9 : f32 to vector<8x1xf32>
    %18 = arith.addf %14, %17 : vector<8x1xf32>
    %19 = math.rsqrt %18 : vector<8x1xf32>
    %20 = vector.broadcast %19 : vector<8x1xf32> to vector<8x32xf32>
    %21 = arith.mulf %16, %20 : vector<8x32xf32>
    %22 = vector.broadcast %2 : vector<1x32xf32> to vector<8x32xf32>
    %23 = arith.mulf %21, %22 : vector<8x32xf32>
    %24 = vector.broadcast %3 : vector<1x32xf32> to vector<8x32xf32>
    %25 = arith.addf %23, %24 : vector<8x32xf32>
    %c0_10 = arith.constant 0 : index
    %c0_11 = arith.constant 0 : index
    %26 = vector.load %arg4[%c0_10, %c0_11] : memref<32x96xf32, #tpu.memory_space<vmem>>, vector<32x96xf32>
    %cst_12 = arith.constant dense<0.000000e+00> : vector<8x96xf32>
    %27 = tpu.matmul %25, %26, %cst_12 {dimension_numbers = #tpu.dot_dimension_numbers<[1], [0], [0], [1], [0, 0, 1, 1], [], []>} : vector<8x32xf32>, vector<32x96xf32>, vector<8x96xf32> -> vector<8x96xf32>
    %c0_13 = arith.constant 0 : index
    %c0_14 = arith.constant 0 : index
    %28 = vector.load %arg5[%c0_13, %c0_14] : memref<1x96xf32, #tpu.memory_space<vmem>>, vector<1x96xf32>
    %29 = vector.broadcast %28 : vector<1x96xf32> to vector<8x96xf32>
    %30 = arith.addf %27, %29 : vector<8x96xf32>
    %31 = vector.extract_strided_slice %30 {offsets = [0, 0], sizes = [8, 8], strides = [1, 1]} : vector<8x96xf32> to vector<8x8xf32>
    %32 = vector.extract_strided_slice %30 {offsets = [0, 8], sizes = [8, 8], strides = [1, 1]} : vector<8x96xf32> to vector<8x8xf32>
    %33 = vector.extract_strided_slice %30 {offsets = [0, 16], sizes = [8, 8], strides = [1, 1]} : vector<8x96xf32> to vector<8x8xf32>
    %34 = vector.extract_strided_slice %30 {offsets = [0, 24], sizes = [8, 8], strides = [1, 1]} : vector<8x96xf32> to vector<8x8xf32>
    %35 = vector.shape_cast %31 : vector<8x8xf32> to vector<1x8x8xf32>
    %36 = vector.shape_cast %32 : vector<8x8xf32> to vector<1x8x8xf32>
    %37 = vector.shape_cast %33 : vector<8x8xf32> to vector<1x8x8xf32>
    %38 = vector.shape_cast %34 : vector<8x8xf32> to vector<1x8x8xf32>
    %39 = tpu.concatenate %35, %36, %37, %38 in 0 : vector<1x8x8xf32>, vector<1x8x8xf32>, vector<1x8x8xf32>, vector<1x8x8xf32> -> vector<4x8x8xf32>
    %40 = vector.extract_strided_slice %30 {offsets = [0, 32], sizes = [8, 8], strides = [1, 1]} : vector<8x96xf32> to vector<8x8xf32>
    %41 = vector.extract_strided_slice %30 {offsets = [0, 40], sizes = [8, 8], strides = [1, 1]} : vector<8x96xf32> to vector<8x8xf32>
    %42 = vector.extract_strided_slice %30 {offsets = [0, 48], sizes = [8, 8], strides = [1, 1]} : vector<8x96xf32> to vector<8x8xf32>
    %43 = vector.extract_strided_slice %30 {offsets = [0, 56], sizes = [8, 8], strides = [1, 1]} : vector<8x96xf32> to vector<8x8xf32>
    %44 = vector.shape_cast %40 : vector<8x8xf32> to vector<1x8x8xf32>
    %45 = vector.shape_cast %41 : vector<8x8xf32> to vector<1x8x8xf32>
    %46 = vector.shape_cast %42 : vector<8x8xf32> to vector<1x8x8xf32>
    %47 = vector.shape_cast %43 : vector<8x8xf32> to vector<1x8x8xf32>
    %48 = tpu.concatenate %44, %45, %46, %47 in 0 : vector<1x8x8xf32>, vector<1x8x8xf32>, vector<1x8x8xf32>, vector<1x8x8xf32> -> vector<4x8x8xf32>
    %49 = vector.extract_strided_slice %30 {offsets = [0, 64], sizes = [8, 8], strides = [1, 1]} : vector<8x96xf32> to vector<8x8xf32>
    %50 = vector.extract_strided_slice %30 {offsets = [0, 72], sizes = [8, 8], strides = [1, 1]} : vector<8x96xf32> to vector<8x8xf32>
    %51 = vector.extract_strided_slice %30 {offsets = [0, 80], sizes = [8, 8], strides = [1, 1]} : vector<8x96xf32> to vector<8x8xf32>
    %52 = vector.extract_strided_slice %30 {offsets = [0, 88], sizes = [8, 8], strides = [1, 1]} : vector<8x96xf32> to vector<8x8xf32>
    %53 = vector.shape_cast %49 : vector<8x8xf32> to vector<1x8x8xf32>
    %54 = vector.shape_cast %50 : vector<8x8xf32> to vector<1x8x8xf32>
    %55 = vector.shape_cast %51 : vector<8x8xf32> to vector<1x8x8xf32>
    %56 = vector.shape_cast %52 : vector<8x8xf32> to vector<1x8x8xf32>
    %57 = tpu.concatenate %53, %54, %55, %56 in 0 : vector<1x8x8xf32>, vector<1x8x8xf32>, vector<1x8x8xf32>, vector<1x8x8xf32> -> vector<4x8x8xf32>
    "tpu.trace_start"() <{level = 10 : i32, message = "ald,amd->alm"}> : () -> ()
    %cst_15 = arith.constant dense<0.000000e+00> : vector<4x8x8xf32>
    %58 = tpu.matmul %39, %48, %cst_15 {dimension_numbers = #tpu.dot_dimension_numbers<[2], [2], [1], [1], [0, 0, 0, 1, 1, 1], [0], [0]>} : vector<4x8x8xf32>, vector<4x8x8xf32>, vector<4x8x8xf32> -> vector<4x8x8xf32>
    "tpu.trace_stop"() : () -> ()
    %cst_16 = arith.constant dense<0xFF800000> : vector<4x8xf32>
    %59 = vector.multi_reduction <maximumf>, %58, %cst_16 [2] : vector<4x8x8xf32> to vector<4x8xf32>
    %60 = vector.shape_cast %59 : vector<4x8xf32> to vector<4x8x1xf32>
    %61 = vector.broadcast %60 : vector<4x8x1xf32> to vector<4x8x8xf32>
    %62 = arith.subf %58, %61 : vector<4x8x8xf32>
    %63 = math.exp %62 : vector<4x8x8xf32>
    %cst_17 = arith.constant dense<0.000000e+00> : vector<4x8xf32>
    %64 = vector.multi_reduction <add>, %63, %cst_17 [2] : vector<4x8x8xf32> to vector<4x8xf32>
    %65 = vector.shape_cast %64 : vector<4x8xf32> to vector<4x8x1xf32>
    %66 = tpu.reciprocal %65 {approx = true} : vector<4x8x1xf32> -> vector<4x8x1xf32>
    %67 = vector.broadcast %66 : vector<4x8x1xf32> to vector<4x8x8xf32>
    %68 = arith.mulf %63, %67 : vector<4x8x8xf32>
    "tpu.trace_start"() <{level = 10 : i32, message = "alm,amd->ald"}> : () -> ()
    %cst_18 = arith.constant dense<0.000000e+00> : vector<4x8x8xf32>
    %69 = tpu.matmul %68, %57, %cst_18 {dimension_numbers = #tpu.dot_dimension_numbers<[2], [1], [1], [2], [0, 0, 0, 1, 1, 2], [0], [0]>} : vector<4x8x8xf32>, vector<4x8x8xf32>, vector<4x8x8xf32> -> vector<4x8x8xf32>
    "tpu.trace_stop"() : () -> ()
    %70 = vector.extract_strided_slice %69 {offsets = [0, 0, 0], sizes = [1, 8, 8], strides = [1, 1, 1]} : vector<4x8x8xf32> to vector<1x8x8xf32>
    %71 = vector.shape_cast %70 : vector<1x8x8xf32> to vector<8x8xf32>
    %72 = vector.extract_strided_slice %69 {offsets = [1, 0, 0], sizes = [1, 8, 8], strides = [1, 1, 1]} : vector<4x8x8xf32> to vector<1x8x8xf32>
    %73 = vector.shape_cast %72 : vector<1x8x8xf32> to vector<8x8xf32>
    %74 = vector.extract_strided_slice %69 {offsets = [2, 0, 0], sizes = [1, 8, 8], strides = [1, 1, 1]} : vector<4x8x8xf32> to vector<1x8x8xf32>
    %75 = vector.shape_cast %74 : vector<1x8x8xf32> to vector<8x8xf32>
    %76 = vector.extract_strided_slice %69 {offsets = [3, 0, 0], sizes = [1, 8, 8], strides = [1, 1, 1]} : vector<4x8x8xf32> to vector<1x8x8xf32>
    %77 = vector.shape_cast %76 : vector<1x8x8xf32> to vector<8x8xf32>
    %78 = tpu.concatenate %71, %73, %75, %77 in 1 : vector<8x8xf32>, vector<8x8xf32>, vector<8x8xf32>, vector<8x8xf32> -> vector<8x32xf32>
    %c0_19 = arith.constant 0 : index
    %c0_20 = arith.constant 0 : index
    %79 = vector.load %arg6[%c0_19, %c0_20] : memref<32x32xf32, #tpu.memory_space<vmem>>, vector<32x32xf32>
    %cst_21 = arith.constant dense<0.000000e+00> : vector<8x32xf32>
    %80 = tpu.matmul %78, %79, %cst_21 {dimension_numbers = #tpu.dot_dimension_numbers<[1], [0], [0], [1], [0, 0, 1, 1], [], []>} : vector<8x32xf32>, vector<32x32xf32>, vector<8x32xf32> -> vector<8x32xf32>
    %81 = arith.addf %1, %80 : vector<8x32xf32>
    %c0_22 = arith.constant 0 : index
    %c0_23 = arith.constant 0 : index
    %82 = vector.load %arg7[%c0_22, %c0_23] : memref<1x32xf32, #tpu.memory_space<vmem>>, vector<1x32xf32>
    %83 = vector.broadcast %82 : vector<1x32xf32> to vector<8x32xf32>
    %84 = arith.addf %81, %83 : vector<8x32xf32>
    %c0_24 = arith.constant 0 : index
    %c0_25 = arith.constant 0 : index
    %85 = vector.load %arg8[%c0_24, %c0_25] : memref<1x32xf32, #tpu.memory_space<vmem>>, vector<1x32xf32>
    %c0_26 = arith.constant 0 : index
    %c0_27 = arith.constant 0 : index
    %86 = vector.load %arg9[%c0_26, %c0_27] : memref<1x32xf32, #tpu.memory_space<vmem>>, vector<1x32xf32>
    %cst_28 = arith.constant dense<0.000000e+00> : vector<8xf32>
    %87 = vector.multi_reduction <add>, %84, %cst_28 [1] : vector<8x32xf32> to vector<8xf32>
    %88 = vector.shape_cast %87 : vector<8xf32> to vector<8x1xf32>
    %cst_29 = arith.constant 3.200000e+01 : f32
    %89 = vector.broadcast %cst_29 : f32 to vector<8x1xf32>
    %90 = arith.divf %88, %89 : vector<8x1xf32>
    %91 = vector.broadcast %90 : vector<8x1xf32> to vector<8x32xf32>
    %92 = arith.subf %84, %91 : vector<8x32xf32>
    %93 = arith.mulf %92, %92 : vector<8x32xf32>
    %cst_30 = arith.constant dense<0.000000e+00> : vector<8xf32>
    %94 = vector.multi_reduction <add>, %93, %cst_30 [1] : vector<8x32xf32> to vector<8xf32>
    %95 = vector.shape_cast %94 : vector<8xf32> to vector<8x1xf32>
    %cst_31 = arith.constant 3.200000e+01 : f32
    %96 = vector.broadcast %cst_31 : f32 to vector<8x1xf32>
    %97 = arith.divf %95, %96 : vector<8x1xf32>
    %98 = vector.broadcast %90 : vector<8x1xf32> to vector<8x32xf32>
    %99 = arith.subf %84, %98 : vector<8x32xf32>
    %cst_32 = arith.constant 9.99999974E-6 : f32
    %100 = vector.broadcast %cst_32 : f32 to vector<8x1xf32>
    %101 = arith.addf %97, %100 : vector<8x1xf32>
    %102 = math.rsqrt %101 : vector<8x1xf32>
    %103 = vector.broadcast %102 : vector<8x1xf32> to vector<8x32xf32>
    %104 = arith.mulf %99, %103 : vector<8x32xf32>
    %105 = vector.broadcast %85 : vector<1x32xf32> to vector<8x32xf32>
    %106 = arith.mulf %104, %105 : vector<8x32xf32>
    %107 = vector.broadcast %86 : vector<1x32xf32> to vector<8x32xf32>
    %108 = arith.addf %106, %107 : vector<8x32xf32>
    %c0_33 = arith.constant 0 : index
    %c0_34 = arith.constant 0 : index
    %109 = vector.load %arg10[%c0_33, %c0_34] : memref<32x64xf32, #tpu.memory_space<vmem>>, vector<32x64xf32>
    %cst_35 = arith.constant dense<0.000000e+00> : vector<8x64xf32>
    %110 = tpu.matmul %108, %109, %cst_35 {dimension_numbers = #tpu.dot_dimension_numbers<[1], [0], [0], [1], [0, 0, 1, 1], [], []>} : vector<8x32xf32>, vector<32x64xf32>, vector<8x64xf32> -> vector<8x64xf32>
    %c0_36 = arith.constant 0 : index
    %c0_37 = arith.constant 0 : index
    %111 = vector.load %arg11[%c0_36, %c0_37] : memref<1x64xf32, #tpu.memory_space<vmem>>, vector<1x64xf32>
    %112 = vector.broadcast %111 : vector<1x64xf32> to vector<8x64xf32>
    %113 = arith.addf %110, %112 : vector<8x64xf32>
    %cst_38 = arith.constant 5.000000e-01 : f32
    %114 = vector.broadcast %cst_38 : f32 to vector<8x64xf32>
    %115 = arith.mulf %114, %113 : vector<8x64xf32>
    %cst_39 = arith.constant 0.707106769 : f32
    %116 = vector.broadcast %cst_39 : f32 to vector<8x64xf32>
    %117 = arith.mulf %113, %116 : vector<8x64xf32>
    %118 = math.erf %117 : vector<8x64xf32>
    %cst_40 = arith.constant 1.000000e+00 : f32
    %119 = vector.broadcast %cst_40 : f32 to vector<8x64xf32>
    %120 = arith.addf %119, %118 : vector<8x64xf32>
    %121 = arith.mulf %115, %120 : vector<8x64xf32>
    %c0_41 = arith.constant 0 : index
    %c0_42 = arith.constant 0 : index
    %122 = vector.load %arg12[%c0_41, %c0_42] : memref<64x32xf32, #tpu.memory_space<vmem>>, vector<64x32xf32>
    %cst_43 = arith.constant dense<0.000000e+00> : vector<8x32xf32>
    %123 = tpu.matmul %121, %122, %cst_43 {dimension_numbers = #tpu.dot_dimension_numbers<[1], [0], [0], [1], [0, 0, 1, 1], [], []>} : vector<8x64xf32>, vector<64x32xf32>, vector<8x32xf32> -> vector<8x32xf32>
    %c0_44 = arith.constant 0 : index
    %c0_45 = arith.constant 0 : index
    %124 = vector.load %arg13[%c0_44, %c0_45] : memref<1x32xf32, #tpu.memory_space<vmem>>, vector<1x32xf32>
    %125 = vector.broadcast %124 : vector<1x32xf32> to vector<8x32xf32>
    %126 = arith.addf %123, %125 : vector<8x32xf32>
    %127 = arith.addf %84, %126 : vector<8x32xf32>
    %128 = vector.shape_cast %127 : vector<8x32xf32> to vector<1x8x32xf32>
    %c0_46 = arith.constant 0 : index
    %c0_47 = arith.constant 0 : index
    %c0_48 = arith.constant 0 : index
    %129 = vector.load %arg14[%c0_46, %c0_47, %c0_48] : memref<1x8x32xf32, #tpu.memory_space<vmem>>, vector<1x8x32xf32>
    tpu.vector_store %arg14[%c0_46, %c0_47, %c0_48], %128 {strides = array<i32>} : memref<1x8x32xf32, #tpu.memory_space<vmem>>, vector<1x8x32xf32>,
    return
  }
  func.func @transform_0(%arg0: i32) -> (i32, i32, i32) {
    %c0_i32 = arith.constant 0 : i32
    %c0_i32_0 = arith.constant 0 : i32
    %c0_i32_1 = arith.constant 0 : i32
    return %arg0, %c0_i32, %c0_i32_0 : i32, i32, i32
  }
  func.func @transform_1(%arg0: i32) -> (i32, i32) {
    %c0_i32 = arith.constant 0 : i32
    %c0_i32_0 = arith.constant 0 : i32
    %c0_i32_1 = arith.constant 0 : i32
    return %c0_i32, %c0_i32_0 : i32, i32
  }
  func.func @transform_2(%arg0: i32) -> (i32, i32) {
    %c0_i32 = arith.constant 0 : i32
    %c0_i32_0 = arith.constant 0 : i32
    %c0_i32_1 = arith.constant 0 : i32
    return %c0_i32, %c0_i32_0 : i32, i32
  }
  func.func @transform_3(%arg0: i32) -> (i32, i32) {
    %c0_i32 = arith.constant 0 : i32
    %c0_i32_0 = arith.constant 0 : i32
    %c0_i32_1 = arith.constant 0 : i32
    return %c0_i32, %c0_i32_0 : i32, i32
  }
  func.func @transform_4(%arg0: i32) -> (i32, i32) {
    %c0_i32 = arith.constant 0 : i32
    %c0_i32_0 = arith.constant 0 : i32
    %c0_i32_1 = arith.constant 0 : i32
    return %c0_i32, %c0_i32_0 : i32, i32
  }
  func.func @transform_5(%arg0: i32) -> (i32, i32) {
    %c0_i32 = arith.constant 0 : i32
    %c0_i32_0 = arith.constant 0 : i32
    %c0_i32_1 = arith.constant 0 : i32
    return %c0_i32, %c0_i32_0 : i32, i32
  }
  func.func @transform_6(%arg0: i32) -> (i32, i32) {
    %c0_i32 = arith.constant 0 : i32
    %c0_i32_0 = arith.constant 0 : i32
    %c0_i32_1 = arith.constant 0 : i32
    return %c0_i32, %c0_i32_0 : i32, i32
  }
  func.func @transform_7(%arg0: i32) -> (i32, i32) {
    %c0_i32 = arith.constant 0 : i32
    %c0_i32_0 = arith.constant 0 : i32
    %c0_i32_1 = arith.constant 0 : i32
    return %c0_i32, %c0_i32_0 : i32, i32
  }
  func.func @transform_8(%arg0: i32) -> (i32, i32) {
    %c0_i32 = arith.constant 0 : i32
    %c0_i32_0 = arith.constant 0 : i32
    %c0_i32_1 = arith.constant 0 : i32
    return %c0_i32, %c0_i32_0 : i32, i32
  }
  func.func @transform_9(%arg0: i32) -> (i32, i32) {
    %c0_i32 = arith.constant 0 : i32
    %c0_i32_0 = arith.constant 0 : i32
    %c0_i32_1 = arith.constant 0 : i32
    return %c0_i32, %c0_i32_0 : i32, i32
  }
  func.func @transform_10(%arg0: i32) -> (i32, i32) {
    %c0_i32 = arith.constant 0 : i32
    %c0_i32_0 = arith.constant 0 : i32
    %c0_i32_1 = arith.constant 0 : i32
    return %c0_i32, %c0_i32_0 : i32, i32
  }
  func.func @transform_11(%arg0: i32) -> (i32, i32) {
    %c0_i32 = arith.constant 0 : i32
    %c0_i32_0 = arith.constant 0 : i32
    %c0_i32_1 = arith.constant 0 : i32
    return %c0_i32, %c0_i32_0 : i32, i32
  }
  func.func @transform_12(%arg0: i32) -> (i32, i32) {
    %c0_i32 = arith.constant 0 : i32
    %c0_i32_0 = arith.constant 0 : i32
    %c0_i32_1 = arith.constant 0 : i32
    return %c0_i32, %c0_i32_0 : i32, i32
  }
  func.func @transform_13(%arg0: i32) -> (i32, i32, i32) {
    %c0_i32 = arith.constant 0 : i32
    %c0_i32_0 = arith.constant 0 : i32
    %c0_i32_1 = arith.constant 0 : i32
    return %arg0, %c0_i32, %c0_i32_0 : i32, i32, i32
  }
}

</mosaic_0001>

<bundles_post_ra>
// kernel: tpu_custom_call.1
= control target key start
LH: loop header
LB: loop body
LE: loop exit
PB: predicated region body
PF: predicated region fallthrough
CT: control target
= control target key end

     0   :  { %18 = vsyncpa [#allocation3], 0  ;;  %s2435_s0 = inlined_call_operand.hbm [shape: f32[2,8,32], index: 0, kind: input, shape index: {}]   ;;  %s2436_s1 = inlined_call_operand.vmem [shape: f32[1,32], index: 1, kind: input, shape index: {}]   ;;  %s2437_s2 = inlined_call_operand.vmem [shape: f32[1,32], index: 2, kind: input, shape index: {}]   ;;  %s2438_s3 = inlined_call_operand.vmem [shape: f32[32,96], index: 3, kind: input, shape index: {}]   ;;  %s2439_s4 = inlined_call_operand.vmem [shape: f32[1,96], index: 4, kind: input, shape index: {}]   ;;  %s2440_s5 = inlined_call_operand.vmem [shape: f32[32,32], index: 5, kind: input, shape index: {}]   ;;  %s2441_s6 = inlined_call_operand.vmem [shape: f32[1,32], index: 6, kind: input, shape index: {}]   ;;  %s2442_s7 = inlined_call_operand.vmem [shape: f32[1,32], index: 7, kind: input, shape index: {}]   ;;  %s2443_s8 = inlined_call_operand.vmem [shape: f32[1,32], index: 8, kind: input, shape index: {}]   ;;  %s2444_s9 = inlined_call_operand.vmem [shape: f32[32,64], index: 9, kind: input, shape index: {}]   ;;  %s2445_s10 = inlined_call_operand.vmem [shape: f32[1,64], index: 10, kind: input, shape index: {}]   ;;  %s2446_s11 = inlined_call_operand.vmem [shape: f32[64,32], index: 11, kind: input, shape index: {}]   ;;  %s2447_s12 = inlined_call_operand.vmem [shape: f32[1,32], index: 12, kind: input, shape index: {}]   ;;  %s2448_s13 = inlined_call_operand.hbm [shape: f32[2,8,32], index: 13, kind: output, shape index: {}]  }
   0x1   :  { %20 = vsyncpa [#allocation3 + $0x1], 0 }
   0x2   :  { %21 = vsyncpa [#allocation4], 0 }
   0x3   :  { %23 = vsyncpa [#allocation4 + $0x1], 0  ;;  %s2086_s25 = smov 0   ;;  %s2088_s26 = smov 0  }
   0x4   :  { %s2090_s27 = smov 0   ;;  %s2092_s28 = smov 0  }
   0x5 LB: > { %2454 = sst [smem:[#allocation8_spill]] %s1989_s25  ;;  %s2107_s29 = sadd.s32 4294967295, %s2001_s28   ;;  %s2001_s28 = sphi %s2092_s28, %s2469_s28   ;;  %s1997_s27 = sphi %s2090_s27, %s2471_s27   ;;  %s1993_s26 = sphi %s2088_s26, %s2473_s26   ;;  %s1989_s25 = sphi %s2086_s25, %s2472_s25  }
   0x6   : > { %2455 = sst [smem:[#allocation9_spill]] %s1997_s27  ;;  %s1628_s30 = sadd.s32 4294967294, %s2001_s28  }
   0x7   : > { %s2111_s14 = sadd.s32 1, %s2001_s28   ;;  %s36_s15 = sadd.s32 1, %s1997_s27 }
   0x8   : > { %2456 = sst [smem:[#allocation10_spill]] %s2111_s14  ;;  %s33_s16 = ssub.s32 %s2001_s28, %s2111_s14 }
   0x9   : > { %p43_p0 = scmp.ne.s32.totalorder %s1997_s27, %s1993_s26  ;;  %p34_p1 = scmp.eq.s32.totalorder %s33_s16, 0 }
   0xa   : > { %p44_p2 = scmp.eq.s32.totalorder %s2001_s28, 0  ;;  %p49_p3 = scmp.ne.s32.totalorder %s1993_s26, %s1989_s25 }
   0xb   : > { %p50_p4 = scmp.eq.s32.totalorder %s2107_s29, 0  ;;  %p325_p7 = scmp.eq.s32.totalorder %s2107_s29, 1 }
   0xc   : > { %s2123_s17 = scalar_select %p34_p1, %s1997_s27, %s36_s15  }
   0xd   : > { %p2125_p5 = por %p44_p2, %p43_p0  ;;  %p2129_p6 = por %p50_p4, %p49_p3 }
   0xe   : > { %2457 = sst [smem:[#allocation11_spill]] %s2123_s17  ;;  %p331_p8 = scmp.eq.s32.totalorder %s1628_s30, 1 }
   0xf   : > { %p1838_p10 = scmp.lt.s32.totalorder %s2001_s28, 2  ;;  %p2136_p11 = por %p325_p7, %p43_p0 }
  0x10   : > { %p2140_p12 = por %p331_p8, %p49_p3  ;;  %s387_s22 = sand.u32 1, %s1997_s27  }
  0x11   : > { %s2460_s20 = scalar_select %p2136_p11, 1, 0 }
  0x12   : > { %s2461_s21 = scalar_select %p2140_p12, 1, 0 }
  0x13   : > { %s1632_s23 = sshll.u32 %s2001_s28, 7  ;;  %s1631_s24 = sshll.u32 %s387_s22, 3 }
  0x14   : > { %s2149_s17 = scalar_lea.hbm %s2435_s0, %s1632_s23  ;;  %s391_s30 = scalar_lea.vmem [#allocation2], %s1631_s24 }
  0x15   : > { %s398_s14 = sshll.u32 %s391_s30, 4  ;;  %p2153_p13 = pnand %p1838_p10, %p2125_p5  ;;  %s2157_s14 = int_to_ptr.vmem [resolvable:$true] %s398_s14 }
  0x16   : > { %s388_s15 = scalar_lea.sflag [#allocation3], %s387_s22  ;;  %s1905_s23 = scalar_lea.hbm %s2149_s17, 128 }
  0x17   : > { %p1906_p2 = scmp.ne.s32.totalorder %s2149_s17, %s1905_s23  ;;  %p1907_p3 = pneg %p2153_p13 }
  0x18   : > { %s1910_s16 = scalar_lea.hbm %s2435_s0, 256  ;;  %p1911_p5 = scmp.lt.u32.totalorder %s2149_s17, %s2435_s0 }
  0x19   : > { %p1908_p4 = pnand %p1907_p3, %p1906_p2  ;;  %p1912_p8 = scmp.lt.u32.totalorder %s1910_s16, %s1905_s23 }
  0x1a   : > { %p1914_p9 = scmp.lt.u32.totalorder %s1905_s23, %s2149_s17 }
  0x1b   : > { %p1909_p7 = pneg %p1908_p4  ;;  %p1913_p10 = por %p1912_p8, %p1911_p5 }
  0x1d   : > { %p1915_p0 = por %p1914_p9, %p1913_p10 }
  0x1f   : > { %p1916_p1 = pnand %p1915_p0, %p1909_p7 }
  0x21   : > { %1919 = shalt.err (!%p1916_p1)
}
  0x22   : > { %s1920_s22 = scalar_lea.vmem %s2157_s14, 128  ;;  %s2003_s18 = smov [#allocation2]  }
  0x23   : > { %p1921_p2 = scmp.ne.s32.totalorder %s2157_s14, %s1920_s22  ;;  %s1925_s24 = sshll.u32 %s2003_s18, 4  ;;  %s1926_s24 = int_to_ptr.vmem [resolvable:$false] %s1925_s24 }
  0x24   : > { %s1927_s27 = scalar_lea.vmem %s1926_s24, 256  ;;  %p1928_p11 = scmp.lt.s32.totalorder %s2157_s14, %s1926_s24 }
  0x25   : > { %p1923_p4 = pnand %p1921_p2, %p1907_p3  ;;  %p1929_p5 = scmp.lt.s32.totalorder %s1927_s27, %s1920_s22 }
  0x27   : > { %p1924_p12 = pneg %p1923_p4  ;;  %p1930_p8 = por %p1929_p5, %p1928_p11 }
  0x29   : > { %p1931_p9 = pnand %p1930_p8, %p1924_p12 }
  0x2b   : > { %1934 = shalt.err (!%p1931_p9)
}
  0x2c   : > { %1833 = dma.hbm_to_vmem [thread:$0]  (!%p2153_p13), %s2149_s17, 128, %s2157_s14, %s388_s15  }
  0x2d   : > { %p2463_p0 = scmp.lt.s32.totalorder %s2001_s28, 3  ;;  %p2464_p1 = scmp.ge.s32.totalorder %s2001_s28, 1 }
  0x2f   : > { %p404_p3 = pnand %p2464_p1, %p2463_p0 }
  0x30   : > { %s2191_s23 = sand.u32 (!%p404_p3), 1, %s1993_s26  }
  0x31   : > { %407 = sbr.rel (%p404_p3) target bundleno = 2670 (0xa6e), region = 72  ;;  %s1634_s16 = sshll.u32 (!%p404_p3), %s2191_s23, 3 }
  0x32   : > { %s410_s30 = scalar_lea.sflag (!%p404_p3), [#allocation3], %s2191_s23  ;;  %s413_s25 = scalar_lea.vmem (!%p404_p3), [#allocation2], %s1634_s16 }
  0x38   : > { %1980 = dma.done.wait (%p2129_p6), %s410_s30, 128  }
  0x39   : > { %1982 = vsyncadd (%p2129_p6), %s410_s30, 4294967168  ;;  %vm459_vm0 = vcmask 261120   ;;  %v2201_v0 = vld [vmem:[%s413_s25] sm:$0xff]  ;;  %v490_v9 = vld [vmem:[%s2438_s3 + $0x10] sm:$0xff]  ;;  %v2004_v10 = vmov 0.0|0.0   ;;  %vm2005_vm1 = vmmov 0  }
  0x3a   : > { %v460_v1 = vsel %vm459_vm0, %v2201_v0, 0.0  ;;  %v488_v7 = vld [vmem:[%s2438_s3] sm:$0xff]  ;;  %v489_v8 = vld [vmem:[%s2438_s3 + $0x8] sm:$0xff]  ;;  %1796 = vmatprep.subr.bf16.mxu1 %v2004_v10  ;;  %v491_v12 = vld [vmem:[%s2438_s3 + $0x18] sm:$0xff]  ;;  %v2006_v13 = vmov 0.0   ;;  %s2007_s22 = smov 104  }
  0x3b   : > { %461 = vadd.xlane.f32.xlu0 %v460_v1  ;;  %v1797_v11 = vpack.c.bf16 %v489_v8, %v488_v7  ;;  %1712 = vmatprep.mubr.msk.f32.mxu1 %vm2005_vm1, %v2006_v13  ;;  %v1800_v14 = vpack.c.bf16 %v491_v12, %v490_v9  ;;  %v1636_v19 = vld [vmem:[%s2436_s1] ss:$0 sm:$0xff]  ;;  %s2008_s18 = smov 120   ;;  %s2009_s24 = smov 112   ;;  %vm581_vm2 = vcmask 64512   ;;  %vm1245_vm3 = vcmask 130048  }
  0x3c   : > { %1725 = vmatprep.subr.mxu0 %v2006_v13  ;;  %1727 = vmatprep.mubr.msk.f32.mxu0 %vm2005_vm1, %v2006_v13  ;;  %v1637_v21 = vld [vmem:[%s2437_s2] ss:$0 sm:$0xff]  ;;  %s2010_s27 = smov 96   ;;  %s2011_s30 = smov 64   ;;  %vm1247_vm4 = vcmask 195584   ;;  %vm1468_vm5 = vcmask 523264  }
  0x3d   : > { %1798 = vmatpush3.bf16.msra.mxu1 %v1797_v11  ;;  %v1638_v24 = vld [vmem:[%s2439_s4] ss:$0 sm:$0xff]  ;;  %s2014_s25 = smov 24   ;;  %p2465_p11 = scmp.ne.s32.totalorder %s2460_s20, 0 }
  0x3e   : > { %1799 = vmatprep.subr.bf16.mxu1 %v2004_v10 }
  0x41   : > { %1801 = vmatpush3.bf16.msra.mxu1 %v1800_v14 }
  0x42   : > { %1715 = vmatprep.subr.mxu1 %v2006_v13 }
  0xc8   : > { %v462_v2 = vpop.xlane.xlu0 %461 }
  0xc9   : > { %v464_v3 = vmul.f32 0.03125, %v462_v2 }
  0xcb   : > { %v465_v4 = vsub.f32 %v2201_v0, %v464_v3 }
  0xcd   : > { %v466_v5 = vmul.f32 %v465_v4, %v465_v4 }
  0xcf   : > { %v467_v6 = vsel %vm459_vm0, %v466_v5, 0.0 }
  0xd0   : > { %468 = vadd.xlane.f32.xlu0 %v467_v6 }
 0x15d   : > { %v469_v15 = vpop.xlane.xlu0 %468 }
 0x15e   : > { %v470_v16 = vmul.f32 0.03125, %v469_v15 }
 0x160   : > { %v471_v17 = vadd.f32 1e-05, %v470_v16 }
 0x162   : > { %1883 = vrsqrt.f32 %v471_v17 }
 0x16c   : > { %v1884_v18 = vpop.eup %1883 }
 0x16d   : > { %v473_v20 = vmul.f32 %v1884_v18, %v465_v4 }
 0x16f   : > { %v480_v22 = vmul.f32 %v1636_v19, %v473_v20 }
 0x171   : > { %v487_v23 = vadd.f32 %v1637_v21, %v480_v22 }
 0x173   : > { %1713 = vmatmul.mubr.msk.f32.vlgmr.msra.gmra.mrb[0].mxu1 %vm459_vm0, %v487_v23 }
 0x174   : > { %1717 = vmatprep.mubr.msk.f32.mxu1 %vm2005_vm1, %v2006_v13 }
 0x246   : > { %v568_v25 = vpop.f32.mrb[0].mxu1 }
 0x247   : > { %v569_v26 = vadd.f32 %v1638_v24, %v568_v25  ;;  %v1714_v27 = vpop.f32.mrb[1].mxu1  ;;  %v1249_v24 = vld [vmem:[%s2440_s5] sm:$0xff]  ;;  %v1250_v25 = vld [vmem:[%s2440_s5 + $0x8] sm:$0xff] }
 0x248   : > { %v1251_v27 = vld [vmem:[%s2440_s5 + $0x10] sm:$0xff] }
 0x249   : > { %577 = vrot.lane.b32.xlu0 %v569_v26, %s2007_s22  ;;  %573 = vrot.lane.b32.xlu1 %v569_v26, %s2008_s18  ;;  %s1661_s22 = sshll.u32 %s2107_s29, 7  ;;  %s455_s18 = scalar_lea.vmem [#allocation5], %s1634_s16 }
 0x24a   : > { %s1545_s29 = scalar_lea.sflag [#allocation4], %s2191_s23  ;;  %s2015_s16 = smov [#allocation5]  }
 0x24b   : > { %s1939_s17 = sshll.u32 %s2015_s16, 4  ;;  %s1940_s17 = int_to_ptr.vmem [resolvable:$false] %s1939_s17 }
 0x24c   : > { %s1941_s19 = scalar_lea.vmem %s1940_s17, 256 }
 0x24d   : > { %575 = vrot.lane.b32.xlu1 %v569_v26, %s2009_s24  ;;  %s1558_s24 = sshll.u32 %s455_s18, 4  ;;  %s2392_s24 = int_to_ptr.vmem [resolvable:$true] %s1558_s24 }
 0x24e   : > { %s1935_s14 = scalar_lea.vmem %s2392_s24, 128  ;;  %p1942_p7 = scmp.lt.s32.totalorder %s2392_s24, %s1940_s17 }
 0x24f   : > { %p1936_p6 = scmp.ne.s32.totalorder %s2392_s24, %s1935_s14  ;;  %p1943_p10 = scmp.lt.s32.totalorder %s1941_s19, %s1935_s14 }
 0x251   : > { %579 = vrot.lane.b32.xlu1 %v569_v26, %s2010_s27  ;;  %p1937_p12 = pnand %p1936_p6, %p2465_p11  ;;  %p1944_p2 = por %p1943_p10, %p1942_p7 }
 0x253   : > { %p1938_p13 = pneg %p1937_p12 }
 0x255   : > { %p1945_p4 = pnand %p1944_p2, %p1938_p13 }
 0x2bb   : > { %v2239_v28 = vpop.permute.xlu1 %573  ;;  %v2245_v30 = vpop.permute.xlu0 %577 }
 0x2bc   : > { %656 = vrot.lane.b32.xlu1 %v2239_v28, %s2010_s27 }
 0x2bf   : > { %v2242_v29 = vpop.permute.xlu1 %575 }
 0x2c0   : > { %732 = vrot.lane.b32.xlu1 %v2242_v29, %s2010_s27 }
 0x2c3   : > { %v580_v31 = vpop.permute.xlu1 %579 }
 0x2c4   : > { %808 = vrot.lane.b32.xlu1 %v2245_v30, %s2010_s27  ;;  %1716 = vmatpush3.xpose.msk.msra.mxu1 %vm581_vm2, %v580_v31  ;;  %s2012_s27 = smov 8  }
 0x2c5   : > { %1720 = vmatprep.subr.mxu1 %v2006_v13 }
 0x2c7   : > { %1718 = vmatmul.mubr.msk.f32.vlgmr.msra.gmra.mrb[2].mxu1 %vm581_vm2, %v569_v26 }
 0x2c8   : > { %1722 = vmatprep.mubr.msk.f32.mxu1 %vm2005_vm1, %v2006_v13 }
 0x32e   : > { %v657_v32 = vpop.permute.xlu1 %656 }
 0x32f   : > { %1721 = vmatpush3.xpose.msk.msra.mxu1 %vm581_vm2, %v657_v32 }
 0x330   : > { %1730 = vmatprep.subr.mxu1 %v2006_v13 }
 0x332   : > { %1723 = vmatmul.mubr.msk.f32.vlgmr.msra.gmra.mrb[4].mxu1 %vm581_vm2, %v2239_v28  ;;  %v733_v33 = vpop.permute.xlu1 %732 }
 0x333   : > { %1726 = vmatpush3.xpose.msk.msra.mxu0 %vm581_vm2, %v733_v33  ;;  %1732 = vmatprep.mubr.msk.f32.mxu1 %vm2005_vm1, %v2006_v13 }
 0x334   : > { %1735 = vmatprep.subr.mxu0 %v2006_v13 }
 0x336   : > { %1728 = vmatmul.mubr.msk.f32.vlgmr.msra.gmra.mrb[0].mxu0 %vm581_vm2, %v2242_v29  ;;  %v809_v34 = vpop.permute.xlu1 %808 }
 0x337   : > { %1731 = vmatpush3.xpose.msk.msra.mxu1 %vm581_vm2, %v809_v34  ;;  %1737 = vmatprep.mubr.msk.f32.mxu0 %vm2005_vm1, %v2006_v13 }
 0x338   : > { %1740 = vmatprep.subr.mxu1 %v2006_v13 }
 0x33a   : > { %1733 = vmatmul.mubr.msk.f32.vlgmr.msra.gmra.mrb[6].mxu1 %vm581_vm2, %v2245_v30 }
 0x33b   : > { %1742 = vmatprep.mubr.msk.f32.mxu1 %vm2005_vm1, %v2006_v13 }
 0x39a   : > { %v652_v35 = vpop.f32.mrb[2].mxu1 }
 0x39b   : > { %v1719_v36 = vpop.f32.mrb[3].mxu1  ;;  %v884_v37 = vsel %vm581_vm2, %v652_v35, -inf }
 0x39c   : > { %885 = vmax.xlane.f32.xlu1 %v884_v37 }
 0x405   : > { %v728_v38 = vpop.f32.mrb[4].mxu1 }
 0x406   : > { %v1724_v39 = vpop.f32.mrb[5].mxu1  ;;  %v887_v40 = vsel %vm581_vm2, %v728_v38, -inf }
 0x407   : > { %888 = vmax.xlane.f32.xlu0 %v887_v40 }
 0x409   : > { %v804_v41 = vpop.f32.mrb[0].mxu0 }
 0x40a   : > { %v1729_v42 = vpop.f32.mrb[1].mxu0  ;;  %v890_v43 = vsel %vm581_vm2, %v804_v41, -inf }
 0x40b   : > { %891 = vmax.xlane.f32.xlu1 %v890_v43  ;;  %v1653_v43 = vld [vmem:[%s2441_s6] ss:$0 sm:$0xff] }
 0x40d   : > { %v880_v44 = vpop.f32.mrb[6].mxu1 }
 0x40e   : > { %v1734_v45 = vpop.f32.mrb[7].mxu1  ;;  %v893_v46 = vsel %vm581_vm2, %v880_v44, -inf }
 0x40f   : > { %894 = vmax.xlane.f32.xlu0 %v893_v46 }
 0x41c   : > { %928 = vrot.lane.b32.xlu1 %v569_v26, %s2011_s30  ;;  %v1803_v26 = vpack.c.bf16 %v1250_v25, %v1249_v24  ;;  %v1658_v25 = vld [vmem:[%s2447_s12] ss:$0 sm:$0xff] }
 0x429   : > { %v886_v47 = vpop.xlane.xlu1 %885 }
 0x42a   : > { %v896_v48 = vsub.f32 %v652_v35, %v886_v47 }
 0x42c   : > { %v900_v49 = vmul.f32 1.442695, %v896_v48 }
 0x42e   : > { %1885 = vpow2.f32 %v900_v49 }
 0x438   : > { %v1886_v50 = vpop.eup %1885 }
 0x439   : > { %v908_v51 = vsel %vm581_vm2, %v1886_v50, 0.0 }
 0x440   : > { %909 = vadd.xlane.f32.xlu1 %v908_v51 }
 0x494   : > { %v889_v52 = vpop.xlane.xlu0 %888 }
 0x495   : > { %v897_v53 = vsub.f32 %v728_v38, %v889_v52  ;;  %v1364_v52 = vld [vmem:[%s2444_s9] sm:$0xff] }
 0x497   : > { %v902_v54 = vmul.f32 1.442695, %v897_v53 }
 0x498   : > { %v892_v55 = vpop.xlane.xlu1 %891 }
 0x499   : > { %1887 = vpow2.f32 %v902_v54  ;;  %v898_v56 = vsub.f32 %v804_v41, %v892_v55  ;;  %v1366_v54 = vld [vmem:[%s2444_s9 + $0x10] sm:$0xff]  ;;  %v1367_v55 = vld [vmem:[%s2444_s9 + $0x18] sm:$0xff] }
 0x49b   : > { %v904_v57 = vmul.f32 1.442695, %v898_v56  ;;  %v1812_v56 = vpack.c.bf16 %v1367_v55, %v1366_v54 }
 0x49c   : > { %v929_v58 = vpop.permute.xlu1 %928  ;;  %v895_v59 = vpop.xlane.xlu0 %894 }
 0x49d   : > { %1889 = vpow2.f32 %v904_v57  ;;  %v899_v60 = vsub.f32 %v880_v44, %v895_v59  ;;  %1736 = vmatpush3.msra.mxu0 %v929_v58 }
 0x49e   : > { %1745 = vmatprep.subr.mxu0 %v2006_v13 }
 0x49f   : > { %v906_v61 = vmul.f32 1.442695, %v899_v60 }
 0x4a1   : > { %1891 = vpow2.f32 %v906_v61  ;;  %v1654_v61 = vld [vmem:[%s2442_s7] ss:$0 sm:$0xff] }
 0x4a3   : > { %v1888_v62 = vpop.eup %1887 }
 0x4a4   : > { %v911_v63 = vsel %vm581_vm2, %v1888_v62, 0.0 }
 0x4a5   : > { %912 = vadd.xlane.f32.xlu0 %v911_v63  ;;  %v1655_v63 = vld [vmem:[%s2443_s8] ss:$0 sm:$0xff] }
 0x4a7   : > { %v1890_v1 = vpop.eup %1889 }
 0x4a8   : > { %v914_v2 = vsel %vm581_vm2, %v1890_v1, 0.0 }
 0x4a9   : > { %915 = vadd.xlane.f32.xlu1 %v914_v2 }
 0x4ab   : > { %v1892_v3 = vpop.eup %1891 }
 0x4ac   : > { %v917_v4 = vsel %vm581_vm2, %v1892_v3, 0.0 }
 0x4ad   : > { %918 = vadd.xlane.f32.xlu0 %v917_v4  ;;  %v1454_v4 = vld [vmem:[%s2446_s11 + $0x8] sm:$0xff] }
 0x4ba   : > { %1080 = vrot.lane.b32.xlu1 %v2242_v29, %s2011_s30 }
 0x4be   : > { %1156 = vrot.lane.b32.xlu1 %v2245_v30, %s2011_s30 }
 0x4c3   : > { %1004 = vrot.lane.b32.xlu0 %v2239_v28, %s2011_s30  ;;  %v1252_v28 = vld [vmem:[%s2440_s5 + $0x18] sm:$0xff]  ;;  %s2013_s30 = smov 16  }
 0x4c4   : > { %v1806_v29 = vpack.c.bf16 %v1252_v28, %v1251_v27 }
 0x4cd   : > { %v910_v5 = vpop.xlane.xlu1 %909 }
 0x4ce   : > { %1893 = vrcp.f32 %v910_v5 }
 0x4d8   : > { %v1894_v6 = vpop.eup %1893 }
 0x4d9   : > { %v924_v7 = vmul.f32 %v1894_v6, %v1886_v50  ;;  %v1455_v6 = vld [vmem:[%s2446_s11 + $0x10] sm:$0xff] }
 0x4db   : > { %1738 = vmatmul.mubr.msk.f32.vlgmr.msra.gmra.mrb[2].mxu0 %vm581_vm2, %v924_v7  ;;  %v1456_v7 = vld [vmem:[%s2446_s11 + $0x18] sm:$0xff] }
 0x4dc   : > { %1747 = vmatprep.mubr.msk.f32.mxu0 %vm2005_vm1, %v2006_v13 }
 0x532   : > { %v913_v8 = vpop.xlane.xlu0 %912 }
 0x533   : > { %1895 = vrcp.f32 %v913_v8  ;;  %v1818_v8 = vpack.c.bf16 %v1456_v7, %v1455_v6 }
 0x536   : > { %v916_v9 = vpop.xlane.xlu1 %915 }
 0x537   : > { %1897 = vrcp.f32 %v916_v9  ;;  %v1457_v9 = vld [vmem:[%s2446_s11 + $0x20] sm:$0xff] }
 0x53a   : > { %v1081_v11 = vpop.permute.xlu1 %1080  ;;  %v919_v12 = vpop.xlane.xlu0 %918 }
 0x53b   : > { %1899 = vrcp.f32 %v919_v12  ;;  %1746 = vmatpush3.msra.mxu0 %v1081_v11  ;;  %v1458_v11 = vld [vmem:[%s2446_s11 + $0x28] sm:$0xff] }
 0x53c   : > { %1802 = vmatprep.subr.bf16.mxu0 %v2004_v10  ;;  %v1821_v12 = vpack.c.bf16 %v1458_v11, %v1457_v9 }
 0x53d   : > { %v1896_v14 = vpop.eup %1895 }
 0x53e   : > { %v925_v15 = vmul.f32 %v1896_v14, %v1888_v62  ;;  %v1005_v16 = vpop.permute.xlu0 %1004  ;;  %v1157_v17 = vpop.permute.xlu1 %1156  ;;  %v1459_v14 = vld [vmem:[%s2446_s11 + $0x30] sm:$0xff] }
 0x53f   : > { %1741 = vmatpush3.msra.mxu1 %v1005_v16 }
 0x540   : > { %1743 = vmatmul.mubr.msk.f32.vlgmr.msra.gmra.mrb[8].mxu1 %vm581_vm2, %v925_v15  ;;  %1750 = vmatprep.subr.mxu1 %v2006_v13  ;;  %v1460_v15 = vld [vmem:[%s2446_s11 + $0x38] sm:$0xff] }
 0x541   : > { %v1898_v18 = vpop.eup %1897  ;;  %1751 = vmatpush3.msra.mxu1 %v1157_v17  ;;  %1752 = vmatprep.mubr.msk.f32.mxu1 %vm2005_vm1, %v2006_v13  ;;  %v1824_v16 = vpack.c.bf16 %v1460_v15, %v1459_v14  ;;  %v1656_v17 = vld [vmem:[%s2445_s10] ss:$0 sm:$0xff] }
 0x542   : > { %v926_v19 = vmul.f32 %v1898_v18, %v1890_v1  ;;  %1808 = vmatprep.subr.bf16.mxu1 %v2004_v10 }
 0x544   : > { %1748 = vmatmul.mubr.msk.f32.vlgmr.msra.gmra.mrb[4].mxu0 %vm581_vm2, %v926_v19 }
 0x545   : > { %v1900_v20 = vpop.eup %1899  ;;  %1763 = vmatprep.mubr.msk.f32.mxu0 %vm2005_vm1, %v2006_v13  ;;  %1804 = vmatpush3.bf16.msra.mxu0 %v1803_v26 }
 0x546   : > { %v927_v21 = vmul.f32 %v1900_v20, %v1892_v3  ;;  %1805 = vmatprep.subr.bf16.mxu0 %v2004_v10  ;;  %v1453_v3 = vld [vmem:[%s2446_s11] sm:$0xff] }
 0x547   : > { %v1815_v5 = vpack.c.bf16 %v1454_v4, %v1453_v3 }
 0x548   : > { %1753 = vmatmul.mubr.msk.f32.vlgmr.msra.gmra.mrb[10].mxu1 %vm581_vm2, %v927_v21 }
 0x549   : > { %1774 = vmatprep.mubr.msk.f32.mxu1 %vm2005_vm1, %v2006_v13  ;;  %1807 = vmatpush3.bf16.msra.mxu0 %v1806_v29 }
 0x54a   : > { %1814 = vmatprep.subr.bf16.mxu0 %v2004_v10 }
 0x5ae   : > { %v1000_v22 = vpop.f32.mrb[2].mxu0 }
 0x5af   : > { %v1739_v23 = vpop.f32.mrb[3].mxu0 }
 0x613   : > { %v1076_v30 = vpop.f32.mrb[8].mxu1 }
 0x614   : > { %1233 = vrot.lane.b32.xlu0 %v1076_v30, %s2012_s27  ;;  %v1744_v31 = vpop.f32.mrb[9].mxu1 }
 0x617   : > { %v1152_v32 = vpop.f32.mrb[4].mxu0 }
 0x618   : > { %1237 = vrot.lane.b32.xlu1 %v1152_v32, %s2013_s30  ;;  %v1749_v33 = vpop.f32.mrb[5].mxu0 }
 0x61b   : > { %v1228_v34 = vpop.f32.mrb[10].mxu1 }
 0x61c   : > { %1241 = vrot.lane.b32.xlu0 %v1228_v34, %s2014_s25  ;;  %v1754_v35 = vpop.f32.mrb[11].mxu1  ;;  %s2390_s25 = scalar_lea.hbm %s2448_s13, %s1661_s22 }
 0x686   : > { %v1234_v36 = vpop.permute.xlu0 %1233 }
 0x687   : > { %v1244_v38 = vsel %vm581_vm2, %v1000_v22, %v1234_v36 }
 0x68a   : > { %v1238_v37 = vpop.permute.xlu1 %1237 }
 0x68b   : > { %v1246_v39 = vsel %vm1245_vm3, %v1244_v38, %v1238_v37 }
 0x68e   : > { %v1242_v40 = vpop.permute.xlu0 %1241 }
 0x68f   : > { %v1248_v41 = vsel %vm1247_vm4, %v1246_v39, %v1242_v40 }
 0x690   : > { %1764 = vmatmul.mubr.msk.f32.vlgmr.msra.gmra.mrb[6].mxu0 %vm459_vm0, %v1248_v41 }
 0x691   : > { %1793 = vmatprep.mubr.msk.f32.mxu0 %vm2005_vm1, %v2006_v13  ;;  %1816 = vmatpush3.bf16.msra.mxu0 %v1815_v5 }
 0x692   : > { %1817 = vmatprep.subr.bf16.mxu0 %v2004_v10 }
 0x695   : > { %1819 = vmatpush3.bf16.msra.mxu0 %v1818_v8 }
 0x696   : > { %1820 = vmatprep.subr.bf16.mxu0 %v2004_v10 }
 0x699   : > { %1822 = vmatpush3.bf16.msra.mxu0 %v1821_v12 }
 0x69a   : > { %1823 = vmatprep.subr.bf16.mxu0 %v2004_v10 }
 0x69d   : > { %1825 = vmatpush3.bf16.msra.mxu0 %v1824_v16 }
 0x763   : > { %v1322_v42 = vpop.f32.mrb[6].mxu0 }
 0x764   : > { %v1326_v44 = vadd.f32 %v1322_v42, %v2201_v0  ;;  %v1765_v45 = vpop.f32.mrb[7].mxu0  ;;  %v1365_v0 = vld [vmem:[%s2444_s9 + $0x8] sm:$0xff] }
 0x765   : > { %v1809_v53 = vpack.c.bf16 %v1365_v0, %v1364_v52 }
 0x766   : > { %v2324_v46 = vadd.f32 %v1653_v43, %v1326_v44 }
 0x767   : > { %1810 = vmatpush3.bf16.msra.mxu1 %v1809_v53 }
 0x768   : > { %v1337_v47 = vsel %vm459_vm0, %v2324_v46, 0.0  ;;  %1811 = vmatprep.subr.bf16.mxu1 %v2004_v10 }
 0x769   : > { %1338 = vadd.xlane.f32.xlu1 %v1337_v47 }
 0x76b   : > { %1813 = vmatpush3.bf16.msra.mxu1 %v1812_v56 }
 0x7f6   : > { %v1339_v48 = vpop.xlane.xlu1 %1338 }
 0x7f7   : > { %v1340_v49 = vmul.f32 0.03125, %v1339_v48 }
 0x7f9   : > { %v1341_v50 = vsub.f32 %v2324_v46, %v1340_v49 }
 0x7fb   : > { %v1342_v51 = vmul.f32 %v1341_v50, %v1341_v50 }
 0x7fd   : > { %v1343_v13 = vsel %vm459_vm0, %v1342_v51, 0.0 }
 0x7fe   : > { %1344 = vadd.xlane.f32.xlu0 %v1343_v13 }
 0x88b   : > { %v1345_v57 = vpop.xlane.xlu0 %1344 }
 0x88c   : > { %v1346_v58 = vmul.f32 0.03125, %v1345_v57 }
 0x88e   : > { %v1347_v59 = vadd.f32 1e-05, %v1346_v58 }
 0x890   : > { %1901 = vrsqrt.f32 %v1347_v59 }
 0x89a   : > { %v1902_v60 = vpop.eup %1901 }
 0x89b   : > { %v1349_v62 = vmul.f32 %v1902_v60, %v1341_v50 }
 0x89d   : > { %v1356_v1 = vmul.f32 %v1654_v61, %v1349_v62 }
 0x89f   : > { %v1363_v2 = vadd.f32 %v1655_v63, %v1356_v1 }
 0x8a1   : > { %1775 = vmatmul.mubr.msk.f32.vlgmr.msra.gmra.mrb[12].mxu1 %vm459_vm0, %v1363_v2 }
 0x974   : > { %v1444_v18 = vpop.f32.mrb[12].mxu1 }
 0x975   : > { %v1445_v19 = vadd.f32 %v1656_v17, %v1444_v18  ;;  %v1776_v20 = vpop.f32.mrb[13].mxu1 }
 0x977   : > { %v1449_v10 = vmul.f32 0.70710677, %v1445_v19  ;;  %v1448_v22 = vmul.f32 0.5, %v1445_v19 }
 0x979   : > { %1903 = verf.f32 %v1449_v10 }
 0x983   : > { %v1904_v21 = vpop.eup %1903 }
 0x984   : > { %v1451_v23 = vadd.f32 1.0, %v1904_v21 }
 0x986   : > { %v1452_v24 = vmul.f32 %v1451_v23, %v1448_v22 }
 0x988   : > { %1794 = vmatmul.mubr.msk.f32.vlgmr.msra.gmra.mrb[8].mxu0 %vm1468_vm5, %v1452_v24 }
 0xa5b   : > { %v1538_v26 = vpop.f32.mrb[8].mxu0 }
 0xa5c   : > { %v1539_v27 = vadd.f32 %v1658_v25, %v1538_v26  ;;  %v1795_v28 = vpop.f32.mrb[9].mxu0 }
 0xa5e   : > { %v1542_v29 = vadd.f32 %v1539_v27, %v2324_v46 }
 0xa60   : > { %1543 = vst.msk [vmem:[%s455_s18] sm:$0xff] %vm459_vm0, %v1542_v29 }
 0xa61   : > { %1948 = shalt.err (!%p1945_p4)
}
 0xa62   : > { %s1949_s23 = scalar_lea.hbm %s2390_s25, 128  ;;  %s1953_s18 = scalar_lea.hbm %s2448_s13, 256 }
 0xa63   : > { %p1950_p5 = scmp.ne.s32.totalorder %s2390_s25, %s1949_s23  ;;  %p1954_p0 = scmp.lt.u32.totalorder %s2390_s25, %s2448_s13 }
 0xa64   : > { %p1955_p1 = scmp.lt.u32.totalorder %s1953_s18, %s1949_s23  ;;  %p1957_p6 = scmp.lt.u32.totalorder %s1949_s23, %s2390_s25 }
 0xa65   : > { %p1951_p8 = pnand %p1950_p5, %p2465_p11 }
 0xa66   : > { %p1956_p3 = por %p1955_p1, %p1954_p0 }
 0xa67   : > { %p1952_p9 = pneg %p1951_p8 }
 0xa68   : > { %p1958_p12 = por %p1957_p6, %p1956_p3 }
 0xa6a   : > { %p1959_p13 = pnand %p1958_p12, %p1952_p9 }
 0xa6c   : > { %1962 = shalt.err (!%p1959_p13)
}
 0xa6d   : > { %1828 = dma.vmem_to_hbm [thread:$0]  (%p2465_p11), %s2392_s24, 128, %s2390_s25, %s1545_s29  }
 0xa6e PF: > { %s2466_s14 = sld [smem:[#allocation8_spill]]  ;;  %p2467_p7 = scmp.ne.s32.totalorder %s2461_s21, 0 }
 0xa6f   : > { %p2468_p10 = scmp.ge.s32.totalorder %s2001_s28, 2 }
 0xa71   : > { %p1835_p2 = pnand %p2468_p10, %p2467_p7 }
 0xa74   : > { %s1570_s16 = sand.u32 1, %s2466_s14  }
 0xa75   : > { %s1571_s17 = scalar_lea.sflag [#allocation4], %s1570_s16 }
 0xa76   : > { %1984 = dma.done.wait (!%p1835_p2), %s1571_s17, 128  }
 0xa77   : > { %1986 = vsyncadd (!%p1835_p2), %s1571_s17, 4294967168  ;;  %s2469_s28 = sld [smem:[#allocation10_spill]]  ;;  %s2470_s19 = sld [smem:[#allocation9_spill]] }
 0xa78   : > { %s2471_s27 = sld [smem:[#allocation11_spill]]  ;;  %s2472_s25 = smov %s1993_s26 }
 0xa7d   : > { %p26_p4 = scmp.ge.s32.totalorder %s2469_s28, 4   ;;  %s2473_s26 = smov %s2470_s19 }
 0xa7f   :  { %28 = sbr.rel (!%p26_p4) target bundleno = 5 (0x5), region = 117 }
 0xa86   :  { %1576 = vsyncpa [#allocation3], 1 }
 0xa87   :  { %1578 = vsyncpa [#allocation3 + $0x1], 1 }
 0xa88   :  { %1579 = vsyncpa [#allocation4], 1 }
 0xa89   :  { %1581 = vsyncpa [#allocation4 + $0x1], 1 }

</bundles_post_ra>
